<compile_context>
chip_gen: v5e
topology: v5e:2x2
jax: 0.10.0
libtpu: 0.0.40
codegen_flags: <defaults>
</compile_context>

<pallas_src>
import functools

import jax
import jax.numpy as jnp
from jax.experimental import pallas as pl
from jax.experimental.pallas import tpu as pltpu


def _round_up(v, m):
    return ((v + m - 1) // m) * m


def _sigmoid(z):
    # single EUP op (tanh) instead of exp + divide
    return 0.5 * jnp.tanh(0.5 * z) + 0.5


def _silu(z):
    return z * _sigmoid(z)


def scam_kernel(x_ref, w_ref, wm_ref, vb_ref, sp_ref, o_ref, *, Bt, C, kr, HW):
    # scalars (SMEM): k-branch BN bias; m2 (2->1) conv x BN folded coefficients
    kb = sp_ref[0]
    c0 = sp_ref[1]
    c1 = sp_ref[2]
    c2 = sp_ref[3]

    # hoisted loop-invariant loads
    w = w_ref[...]            # (kr + 8, C): rows[:C] = bn_scale*wv, row kr = bn_scale*wk^T
    wm = wm_ref[...]          # (C, C) f32  (m branch, no BN)
    vb = vb_ref[...]          # (C, 1) f32  (v-branch folded BN bias)
    inv_hw = jnp.float32(1.0 / HW)

    def body(b, carry):
        x_in = x_ref[b]                                      # (C, HW) in HBM dtype
        x32 = x_in.astype(jnp.float32)
        x_mx = x_in.astype(w.dtype)                          # bf16 MXU operand (default)

        # ---- fused 1x1 convs: v (C->C) and k (C->1) in one MXU matmul ----
        vk = jnp.dot(w, x_mx, preferred_element_type=jnp.float32)   # (kr+8, HW) f32
        v = _silu(vk[:C] + vb)                               # (C, HW)
        k_act = _silu(vk[kr:kr + 1] + kb)                    # (1, HW)

        # ---- spatial softmax of the k branch ----
        k_act = k_act - jnp.max(k_act, axis=1, keepdims=True)
        k_e = jnp.exp(k_act)
        k_sm = k_e * (1.0 / jnp.sum(k_e, axis=1, keepdims=True))    # (1, HW)

        # ---- channel softmaxes of the adaptive avg / max pools (tiny tiles) ----
        def softmax_c(z):
            z = z - jnp.max(z, axis=0, keepdims=True)
            e = jnp.exp(z)
            return e * (1.0 / jnp.sum(e, axis=0, keepdims=True))

        avg = jnp.sum(x32, axis=1, keepdims=True) * inv_hw          # (C, 1)
        mxp = jnp.max(x32, axis=1, keepdims=True)                   # (C, 1)
        a = softmax_c(avg)
        mc = softmax_c(mxp)
        # fold m2's (2->1) conv + BN scale into one channel vector:
        #   c0*(a@v) + c1*(mc@v) == (c0*a + c1*mc) @ v
        u = c0 * a + c1 * mc                                         # (C, 1)

        # ---- attention aggregations ----
        y1 = jnp.sum(v * k_sm, axis=1, keepdims=True)                # (C, 1)
        m2_lin = jnp.sum(u * v, axis=0, keepdims=True)               # (1, HW)

        # ---- m (C->C, no BN) and the m2 gate ----
        # TODO(synk): batch this tiny matmul across the Bt tile ((C, Bt) scratch)
        # to amortize MXU fill/drain when C is large.
        my = _silu(jnp.dot(wm, y1, preferred_element_type=jnp.float32))  # (C, 1)
        gate = _sigmoid(_silu(m2_lin + c2))                               # (1, HW)

        # ---- residual ----
        o_ref[b] = (x32 + my * gate).astype(o_ref.dtype)
        return carry

    jax.lax.fori_loop(0, Bt, body, 0)


def _vmem_capacity_bytes():
    try:
        info = pltpu.get_tpu_info()
        cap = int(getattr(info, "vmem_capacity_bytes", 0))
        if cap > 0:
            return cap
    except Exception:
        pass
    return 64 * 2**20   # conservative fallback (v7x-sized)


def scam_forward(x, params, out_dtype=None, mxu_dtype=jnp.bfloat16):
    """x: (N, C, H, W). Returns (N, C, H, W) in out_dtype (default: x.dtype)."""
    wk, wv, wm, w2, ksb, vscale, vbias, m2sb = params
    N, C, H, W = x.shape
    HW = H * W
    if out_dtype is None:
        out_dtype = x.dtype

    kr = _round_up(C, 8)     # sublane-aligned row index for the k branch
    R = kr + 8               # stacked-weight rows: v rows, zero pad, k row, zero pad

    # ---- fold BatchNorm (inference mode) into the conv weights ----
    wv_f = (wv * vscale).astype(jnp.float32)                 # (C, C) per-output-row scale
    wk_row = (ksb[0, 0] * wk[:, 0]).astype(jnp.float32)      # (C,)
    w_comb = jnp.zeros((R, C), jnp.float32)
    w_comb = w_comb.at[:C, :].set(wv_f)
    w_comb = w_comb.at[kr, :].set(wk_row)
    w_comb = w_comb.astype(mxu_dtype)                        # bf16 MXU operands by default
    wm_f = wm.astype(jnp.float32)                            # tiny matmul stays f32
    vb_c = vbias.reshape(C, 1).astype(jnp.float32)

    # tiny scalars -> SMEM (k bias; m2 conv x BN folded coefficients)
    scal = jnp.zeros((4,), jnp.float32)
    scal = scal.at[0].set(ksb[0, 1])
    scal = scal.at[1].set(w2[0, 0] * m2sb[0, 0])
    scal = scal.at[2].set(w2[0, 1] * m2sb[0, 0])
    scal = scal.at[3].set(m2sb[0, 1])

    # ---- x stays unpadded: (N, C, HW); reshape is metadata-only (no HBM pass) ----
    x2 = x.reshape(N, C, HW)

    # ---- pick the per-step batch tile Bt against a generation-aware VMEM budget ----
    vmem_cap = _vmem_capacity_bytes()
    budget = int(0.70 * vmem_cap)
    HW_lane = _round_up(HW, 128)

    def tile_bytes(dt):
        it = jnp.dtype(dt).itemsize
        sub = _round_up(C, 8 * max(1, 4 // it))
        return sub * HW_lane * it

    io_per_batch = 2 * (tile_bytes(x2.dtype) + tile_bytes(out_dtype))  # double-buffered in+out
    scratch_f32 = 8 * R * HW_lane * 4        # fori_loop-bounded per-iteration temporaries
    fixed = scratch_f32 + (2 << 20)          # + weights / margin

    bt_cap = min(N, 16)
    if N >= 2:
        bt_cap = min(bt_cap, max(1, N // 2))  # keep grid >= 2 (v7x dual-TC + DMA overlap)
    Bt = 1
    for bt in range(bt_cap, 0, -1):
        if N % bt == 0 and bt * io_per_batch + fixed <= budget:
            Bt = bt
            break
    # TODO(synk): if even Bt=1 exceeds the VMEM budget (huge C*HW, esp. v7x 64 MiB),
    # add an "arbitrary" HW grid axis with an online-softmax restructure of the
    # k branch / y1 / m2_lin reductions.
    # TODO(synk): on v6e/v7x the big elementwise chain (silu(v), v*k_sm, u*v) could
    # run in bf16 (2x EUP throughput); kept f32 here so the same kernel is v5e-safe.

    est = Bt * io_per_batch + fixed
    vmem_limit = int(min(int(0.92 * vmem_cap), max(2 * est, 32 * 2**20)))

    kernel = functools.partial(scam_kernel, Bt=Bt, C=C, kr=kr, HW=HW)

    out = pl.pallas_call(
        kernel,
        out_shape=jax.ShapeDtypeStruct((N, C, HW), out_dtype),
        grid=(N // Bt,),
        in_specs=[
            pl.BlockSpec((Bt, C, HW), lambda g: (g, 0, 0)),        # x (unpadded)
            pl.BlockSpec((R, C), lambda g: (0, 0)),                # fused v/k weight
            pl.BlockSpec((C, C), lambda g: (0, 0)),                # m weight
            pl.BlockSpec((C, 1), lambda g: (0, 0)),                # v BN bias
            pl.BlockSpec(memory_space=pltpu.MemorySpace.SMEM),     # scalars
        ],
        out_specs=pl.BlockSpec((Bt, C, HW), lambda g: (g, 0, 0)),
        compiler_params=pltpu.CompilerParams(
            dimension_semantics=("parallel",),
            vmem_limit_bytes=vmem_limit),
    )(x2, w_comb, wm_f, vb_c, scal)

    return out.reshape(N, C, H, W)


# ---------------- pure-JAX reference (for correctness check) ----------------
def scam_ref(x, params):
    hi = jax.lax.Precision.HIGHEST
    wk, wv, wm, w2, ksb, vscale, vbias, m2sb = params
    N, C, H, W = x.shape
    HW = H * W
    x2 = x.reshape(N, C, HW)
    a = jax.nn.softmax(jnp.mean(x2, axis=2), axis=1)                     # (N, C)
    mchan = jax.nn.softmax(jnp.max(x2, axis=2), axis=1)                  # (N, C)
    k_pre = jnp.einsum('c,ncs->ns', wk[:, 0], x2, precision=hi)
    k_sm = jax.nn.softmax(jax.nn.silu(k_pre * ksb[0, 0] + ksb[0, 1]), axis=1)
    v_pre = jnp.einsum('oc,ncs->nos', wv, x2, precision=hi)
    v = jax.nn.silu(v_pre * vscale[None, :, 0, None] + vbias[None, :, 0, None])
    y1 = jnp.einsum('ncs,ns->nc', v, k_sm, precision=hi)
    y_avg = jnp.einsum('nc,ncs->ns', a, v, precision=hi)
    y_max = jnp.einsum('nc,ncs->ns', mchan, v, precision=hi)
    my = jax.nn.silu(jnp.einsum('oc,nc->no', wm, y1, precision=hi))
    m2_pre = w2[0, 0] * y_avg + w2[0, 1] * y_max
    gate = jax.nn.sigmoid(jax.nn.silu(m2_pre * m2sb[0, 0] + m2sb[0, 1]))
    y = my[:, :, None] * gate[:, None, :]
    return (x2 + y).reshape(N, C, H, W)


def make_params(key, C, eps=1e-5):
    ks = jax.random.split(key, 8)

    def bn_fold(k, cc):
        kg, kb, km, kv = jax.random.split(k, 4)
        gamma = 1.0 + 0.1 * jax.random.normal(kg, (cc,), jnp.float32)
        beta = 0.1 * jax.random.normal(kb, (cc,), jnp.float32)
        mean = 0.1 * jax.random.normal(km, (cc,), jnp.float32)
        var = 1.0 + 0.1 * jax.random.uniform(kv, (cc,), jnp.float32)
        scale = gamma / jnp.sqrt(var + eps)
        bias = beta - mean * scale
        return scale, bias

    wk = 0.3 * jax.random.normal(ks[0], (C, 1), jnp.float32)   # k.conv weight (1,C,1,1) as column
    wv = 0.3 * jax.random.normal(ks[1], (C, C), jnp.float32)   # v.conv weight (C,C,1,1)
    wm = 0.3 * jax.random.normal(ks[2], (C, C), jnp.float32)   # m.conv weight (C,C,1,1)
    w2 = 0.3 * jax.random.normal(ks[3], (1, 2), jnp.float32)   # m2.conv weight (1,2,1,1)

    ks_scale, ks_bias = bn_fold(ks[4], 1)
    ksb = jnp.stack([ks_scale, ks_bias], axis=1)               # (1, 2)
    vs, vb = bn_fold(ks[5], C)
    vscale, vbias = vs.reshape(C, 1), vb.reshape(C, 1)
    m2s, m2b = bn_fold(ks[6], 1)
    m2sb = jnp.stack([m2s, m2b], axis=1)                       # (1, 2)
    return (wk, wv, wm, w2, ksb, vscale, vbias, m2sb)


if __name__ == "__main__":
    key = jax.random.PRNGKey(0)
    kx, kp = jax.random.split(key)

    # case 1: C=4 (ragged sublanes), HW=256 (lane aligned), N=2 -> Bt=1, grid=2
    N, C, H, W = 2, 4, 16, 16
    x = jax.random.normal(kx, (N, C, H, W), jnp.float32)
    params = make_params(kp, C)
    ref = scam_ref(x, params)

    # f32-MXU path: tight structural correctness check
    out_f32 = jax.block_until_ready(scam_forward(x, params, mxu_dtype=jnp.float32))
    assert out_f32.shape == (N, C, H, W)
    err = float(jnp.max(jnp.abs(out_f32 - ref)))
    assert jnp.allclose(out_f32, ref, atol=2e-3, rtol=2e-3), f"f32 max abs err {err}"

    # default bf16-MXU path (perf): loose tolerance for bf16 operand rounding
    out_bf = jax.block_until_ready(scam_forward(x, params))
    err_bf = float(jnp.max(jnp.abs(out_bf - ref)))
    assert err_bf < 1.5e-1, f"bf16-mxu max abs err {err_bf}"

    # case 2: ragged spatial size (HW=49) and Bt=2 batching (N=4, C=8)
    N2, C2, H2, W2 = 4, 8, 7, 7
    x2 = jax.random.normal(jax.random.fold_in(kx, 1), (N2, C2, H2, W2), jnp.float32)
    params2 = make_params(jax.random.fold_in(kp, 1), C2)
    ref2 = scam_ref(x2, params2)

    out2_f32 = jax.block_until_ready(scam_forward(x2, params2, mxu_dtype=jnp.float32))
    err2 = float(jnp.max(jnp.abs(out2_f32 - ref2)))
    assert jnp.allclose(out2_f32, ref2, atol=2e-3, rtol=2e-3), f"ragged f32 max abs err {err2}"

    out2_bf = jax.block_until_ready(scam_forward(x2, params2))
    err2_bf = float(jnp.max(jnp.abs(out2_bf - ref2)))
    assert err2_bf < 1.5e-1, f"ragged bf16-mxu max abs err {err2_bf}"

    # case 3: bf16 output writes (v6e/v7x write-traffic halving), loose tolerance
    out_b16 = jax.block_until_ready(scam_forward(x, params, out_dtype=jnp.bfloat16))
    err_b16 = float(jnp.max(jnp.abs(out_b16.astype(jnp.float32) - ref)))
    assert err_b16 < 2e-1, f"bf16-out max abs err {err_b16}"

    print("KERNEL_OK")
</pallas_src>

<mosaic_0001>
module attributes {stable_mosaic.version = 11 : i64} {
  func.func @scam_kernel(%arg0: i32, %arg1: memref<1x4x256xf32, #tpu.memory_space<vmem>>, %arg2: memref<16x4xf32, #tpu.memory_space<vmem>>, %arg3: memref<4x4xf32, #tpu.memory_space<vmem>>, %arg4: memref<4x1xf32, #tpu.memory_space<vmem>>, %arg5: memref<4xf32, #tpu.memory_space<smem>>, %arg6: memref<1x4x256xf32, #tpu.memory_space<vmem>>) attributes {dimension_semantics = [#tpu.dimension_semantics<parallel>], iteration_bounds = array<i64: 2>, scalar_prefetch = 0 : i64, scratch_operands = 0 : i64, tpu.core_type = #tpu.core_type<tc>, window_params = [{transform_indices = @transform_0, window_bounds = array<i64: 1, 4, 256>}, {pipeline_mode = #tpu.pipeline_mode<synchronous>, transform_indices = @transform_1, window_bounds = array<i64: 16, 4>}, {pipeline_mode = #tpu.pipeline_mode<synchronous>, transform_indices = @transform_2, window_bounds = array<i64: 4, 4>}, {pipeline_mode = #tpu.pipeline_mode<synchronous>, transform_indices = @transform_3, window_bounds = array<i64: 4, 1>}, {transform_indices = @transform_4, window_bounds = array<i64: 4>}, {transform_indices = @transform_5, window_bounds = array<i64: 1, 4, 256>}]} {
    %c0 = arith.constant 0 : index
    %0 = memref.load %arg5[%c0] : memref<4xf32, #tpu.memory_space<smem>>
    %c1 = arith.constant 1 : index
    %1 = memref.load %arg5[%c1] : memref<4xf32, #tpu.memory_space<smem>>
    %c2 = arith.constant 2 : index
    %2 = memref.load %arg5[%c2] : memref<4xf32, #tpu.memory_space<smem>>
    %c3 = arith.constant 3 : index
    %3 = memref.load %arg5[%c3] : memref<4xf32, #tpu.memory_space<smem>>
    %c0_0 = arith.constant 0 : index
    %c0_1 = arith.constant 0 : index
    %4 = vector.load %arg2[%c0_0, %c0_1] : memref<16x4xf32, #tpu.memory_space<vmem>>, vector<16x4xf32>
    %c0_2 = arith.constant 0 : index
    %c0_3 = arith.constant 0 : index
    %5 = vector.load %arg3[%c0_2, %c0_3] : memref<4x4xf32, #tpu.memory_space<vmem>>, vector<4x4xf32>
    %c0_4 = arith.constant 0 : index
    %c0_5 = arith.constant 0 : index
    %6 = vector.load %arg4[%c0_4, %c0_5] : memref<4x1xf32, #tpu.memory_space<vmem>>, vector<4x1xf32>
    %cst = arith.constant 3.906250e-03 : f32
    %c0_i32 = arith.constant 0 : i32
    %7 = arith.index_cast %c0_i32 : i32 to index
    %c0_6 = arith.constant 0 : index
    %c0_7 = arith.constant 0 : index
    %8 = vector.load %arg1[%7, %c0_6, %c0_7] : memref<1x4x256xf32, #tpu.memory_space<vmem>>, vector<1x4x256xf32>
    %9 = vector.shape_cast %8 : vector<1x4x256xf32> to vector<4x256xf32>
    %cst_8 = arith.constant dense<0.000000e+00> : vector<16x256xf32>
    %10 = tpu.matmul %4, %9, %cst_8 {dimension_numbers = #tpu.dot_dimension_numbers<[1], [0], [0], [1], [0, 0, 1, 1], [], []>} : vector<16x4xf32>, vector<4x256xf32>, vector<16x256xf32> -> vector<16x256xf32>
    %11 = vector.extract_strided_slice %10 {offsets = [0, 0], sizes = [4, 256], strides = [1, 1]} : vector<16x256xf32> to vector<4x256xf32>
    %12 = vector.broadcast %6 : vector<4x1xf32> to vector<4x256xf32>
    %13 = arith.addf %11, %12 : vector<4x256xf32>
    %cst_9 = arith.constant 5.000000e-01 : f32
    %14 = vector.broadcast %cst_9 : f32 to vector<4x256xf32>
    %15 = arith.mulf %14, %13 : vector<4x256xf32>
    %16 = math.tanh %15 : vector<4x256xf32>
    %cst_10 = arith.constant 5.000000e-01 : f32
    %17 = vector.broadcast %cst_10 : f32 to vector<4x256xf32>
    %18 = arith.mulf %17, %16 : vector<4x256xf32>
    %cst_11 = arith.constant 5.000000e-01 : f32
    %19 = vector.broadcast %cst_11 : f32 to vector<4x256xf32>
    %20 = arith.addf %18, %19 : vector<4x256xf32>
    %21 = arith.mulf %13, %20 : vector<4x256xf32>
    %22 = vector.extract_strided_slice %10 {offsets = [8, 0], sizes = [1, 256], strides = [1, 1]} : vector<16x256xf32> to vector<1x256xf32>
    %23 = vector.broadcast %0 : f32 to vector<1x256xf32>
    %24 = arith.addf %22, %23 : vector<1x256xf32>
    %cst_12 = arith.constant 5.000000e-01 : f32
    %25 = vector.broadcast %cst_12 : f32 to vector<1x256xf32>
    %26 = arith.mulf %25, %24 : vector<1x256xf32>
    %27 = math.tanh %26 : vector<1x256xf32>
    %cst_13 = arith.constant 5.000000e-01 : f32
    %28 = vector.broadcast %cst_13 : f32 to vector<1x256xf32>
    %29 = arith.mulf %28, %27 : vector<1x256xf32>
    %cst_14 = arith.constant 5.000000e-01 : f32
    %30 = vector.broadcast %cst_14 : f32 to vector<1x256xf32>
    %31 = arith.addf %29, %30 : vector<1x256xf32>
    %32 = arith.mulf %24, %31 : vector<1x256xf32>
    %cst_15 = arith.constant dense<0xFF800000> : vector<1xf32>
    %33 = vector.multi_reduction <maximumf>, %32, %cst_15 [1] : vector<1x256xf32> to vector<1xf32>
    %34 = vector.shape_cast %33 : vector<1xf32> to vector<1x1xf32>
    %35 = vector.broadcast %34 : vector<1x1xf32> to vector<1x256xf32>
    %36 = arith.subf %32, %35 : vector<1x256xf32>
    %37 = math.exp %36 : vector<1x256xf32>
    %cst_16 = arith.constant dense<0.000000e+00> : vector<1xf32>
    %38 = vector.multi_reduction <add>, %37, %cst_16 [1] : vector<1x256xf32> to vector<1xf32>
    %39 = vector.shape_cast %38 : vector<1xf32> to vector<1x1xf32>
    %cst_17 = arith.constant 1.000000e+00 : f32
    %40 = vector.broadcast %cst_17 : f32 to vector<1x1xf32>
    %41 = arith.divf %40, %39 : vector<1x1xf32>
    %42 = vector.broadcast %41 : vector<1x1xf32> to vector<1x256xf32>
    %43 = arith.mulf %37, %42 : vector<1x256xf32>
    %cst_18 = arith.constant dense<0.000000e+00> : vector<4xf32>
    %44 = vector.multi_reduction <add>, %9, %cst_18 [1] : vector<4x256xf32> to vector<4xf32>
    %45 = vector.shape_cast %44 : vector<4xf32> to vector<4x1xf32>
    %46 = vector.broadcast %cst : f32 to vector<4x1xf32>
    %47 = arith.mulf %45, %46 : vector<4x1xf32>
    %cst_19 = arith.constant dense<0xFF800000> : vector<4xf32>
    %48 = vector.multi_reduction <maximumf>, %9, %cst_19 [1] : vector<4x256xf32> to vector<4xf32>
    %49 = vector.shape_cast %48 : vector<4xf32> to vector<4x1xf32>
    %cst_20 = arith.constant dense<0xFF800000> : vector<1xf32>
    %50 = vector.multi_reduction <maximumf>, %47, %cst_20 [0] : vector<4x1xf32> to vector<1xf32>
    %51 = vector.shape_cast %50 : vector<1xf32> to vector<1x1xf32>
    %52 = vector.broadcast %51 : vector<1x1xf32> to vector<4x1xf32>
    %53 = arith.subf %47, %52 : vector<4x1xf32>
    %54 = math.exp %53 : vector<4x1xf32>
    %cst_21 = arith.constant dense<0.000000e+00> : vector<1xf32>
    %55 = vector.multi_reduction <add>, %54, %cst_21 [0] : vector<4x1xf32> to vector<1xf32>
    %56 = vector.shape_cast %55 : vector<1xf32> to vector<1x1xf32>
    %cst_22 = arith.constant 1.000000e+00 : f32
    %57 = vector.broadcast %cst_22 : f32 to vector<1x1xf32>
    %58 = arith.divf %57, %56 : vector<1x1xf32>
    %59 = vector.broadcast %58 : vector<1x1xf32> to vector<4x1xf32>
    %60 = arith.mulf %54, %59 : vector<4x1xf32>
    %cst_23 = arith.constant dense<0xFF800000> : vector<1xf32>
    %61 = vector.multi_reduction <maximumf>, %49, %cst_23 [0] : vector<4x1xf32> to vector<1xf32>
    %62 = vector.shape_cast %61 : vector<1xf32> to vector<1x1xf32>
    %63 = vector.broadcast %62 : vector<1x1xf32> to vector<4x1xf32>
    %64 = arith.subf %49, %63 : vector<4x1xf32>
    %65 = math.exp %64 : vector<4x1xf32>
    %cst_24 = arith.constant dense<0.000000e+00> : vector<1xf32>
    %66 = vector.multi_reduction <add>, %65, %cst_24 [0] : vector<4x1xf32> to vector<1xf32>
    %67 = vector.shape_cast %66 : vector<1xf32> to vector<1x1xf32>
    %cst_25 = arith.constant 1.000000e+00 : f32
    %68 = vector.broadcast %cst_25 : f32 to vector<1x1xf32>
    %69 = arith.divf %68, %67 : vector<1x1xf32>
    %70 = vector.broadcast %69 : vector<1x1xf32> to vector<4x1xf32>
    %71 = arith.mulf %65, %70 : vector<4x1xf32>
    %72 = vector.broadcast %1 : f32 to vector<4x1xf32>
    %73 = arith.mulf %72, %60 : vector<4x1xf32>
    %74 = vector.broadcast %2 : f32 to vector<4x1xf32>
    %75 = arith.mulf %74, %71 : vector<4x1xf32>
    %76 = arith.addf %73, %75 : vector<4x1xf32>
    %77 = vector.broadcast %43 : vector<1x256xf32> to vector<4x256xf32>
    %78 = arith.mulf %21, %77 : vector<4x256xf32>
    %cst_26 = arith.constant dense<0.000000e+00> : vector<4xf32>
    %79 = vector.multi_reduction <add>, %78, %cst_26 [1] : vector<4x256xf32> to vector<4xf32>
    %80 = vector.shape_cast %79 : vector<4xf32> to vector<4x1xf32>
    %81 = vector.broadcast %76 : vector<4x1xf32> to vector<4x256xf32>
    %82 = arith.mulf %81, %21 : vector<4x256xf32>
    %cst_27 = arith.constant dense<0.000000e+00> : vector<256xf32>
    %83 = vector.multi_reduction <add>, %82, %cst_27 [0] : vector<4x256xf32> to vector<256xf32>
    %84 = vector.shape_cast %83 : vector<256xf32> to vector<1x256xf32>
    %cst_28 = arith.constant dense<0.000000e+00> : vector<4x1xf32>
    %85 = tpu.matmul %5, %80, %cst_28 {dimension_numbers = #tpu.dot_dimension_numbers<[1], [0], [0], [1], [0, 0, 1, 1], [], []>} : vector<4x4xf32>, vector<4x1xf32>, vector<4x1xf32> -> vector<4x1xf32>
    %cst_29 = arith.constant 5.000000e-01 : f32
    %86 = vector.broadcast %cst_29 : f32 to vector<4x1xf32>
    %87 = arith.mulf %86, %85 : vector<4x1xf32>
    %88 = math.tanh %87 : vector<4x1xf32>
    %cst_30 = arith.constant 5.000000e-01 : f32
    %89 = vector.broadcast %cst_30 : f32 to vector<4x1xf32>
    %90 = arith.mulf %89, %88 : vector<4x1xf32>
    %cst_31 = arith.constant 5.000000e-01 : f32
    %91 = vector.broadcast %cst_31 : f32 to vector<4x1xf32>
    %92 = arith.addf %90, %91 : vector<4x1xf32>
    %93 = arith.mulf %85, %92 : vector<4x1xf32>
    %94 = vector.broadcast %3 : f32 to vector<1x256xf32>
    %95 = arith.addf %84, %94 : vector<1x256xf32>
    %cst_32 = arith.constant 5.000000e-01 : f32
    %96 = vector.broadcast %cst_32 : f32 to vector<1x256xf32>
    %97 = arith.mulf %96, %95 : vector<1x256xf32>
    %98 = math.tanh %97 : vector<1x256xf32>
    %cst_33 = arith.constant 5.000000e-01 : f32
    %99 = vector.broadcast %cst_33 : f32 to vector<1x256xf32>
    %100 = arith.mulf %99, %98 : vector<1x256xf32>
    %cst_34 = arith.constant 5.000000e-01 : f32
    %101 = vector.broadcast %cst_34 : f32 to vector<1x256xf32>
    %102 = arith.addf %100, %101 : vector<1x256xf32>
    %103 = arith.mulf %95, %102 : vector<1x256xf32>
    %cst_35 = arith.constant 5.000000e-01 : f32
    %104 = vector.broadcast %cst_35 : f32 to vector<1x256xf32>
    %105 = arith.mulf %104, %103 : vector<1x256xf32>
    %106 = math.tanh %105 : vector<1x256xf32>
    %cst_36 = arith.constant 5.000000e-01 : f32
    %107 = vector.broadcast %cst_36 : f32 to vector<1x256xf32>
    %108 = arith.mulf %107, %106 : vector<1x256xf32>
    %cst_37 = arith.constant 5.000000e-01 : f32
    %109 = vector.broadcast %cst_37 : f32 to vector<1x256xf32>
    %110 = arith.addf %108, %109 : vector<1x256xf32>
    %111 = vector.broadcast %93 : vector<4x1xf32> to vector<4x256xf32>
    %112 = vector.broadcast %110 : vector<1x256xf32> to vector<4x256xf32>
    %113 = arith.mulf %111, %112 : vector<4x256xf32>
    %114 = arith.addf %9, %113 : vector<4x256xf32>
    %115 = arith.index_cast %c0_i32 : i32 to index
    %c0_38 = arith.constant 0 : index
    %c0_39 = arith.constant 0 : index
    %116 = vector.load %arg6[%115, %c0_38, %c0_39] : memref<1x4x256xf32, #tpu.memory_space<vmem>>, vector<1x4x256xf32>
    %117 = vector.shape_cast %116 : vector<1x4x256xf32> to vector<4x256xf32>
    %118 = vector.shape_cast %114 : vector<4x256xf32> to vector<1x4x256xf32>
    tpu.vector_store %arg6[%115, %c0_38, %c0_39], %118 {strides = array<i32>} : memref<1x4x256xf32, #tpu.memory_space<vmem>>, vector<1x4x256xf32>,
    %c1_i32 = arith.constant 1 : i32
    return
  }
  func.func @transform_0(%arg0: i32) -> (i32, i32, i32) {
    %c0_i32 = arith.constant 0 : i32
    %c0_i32_0 = arith.constant 0 : i32
    %c0_i32_1 = arith.constant 0 : i32
    return %arg0, %c0_i32, %c0_i32_0 : i32, i32, i32
  }
  func.func @transform_1(%arg0: i32) -> (i32, i32) {
    %c0_i32 = arith.constant 0 : i32
    %c0_i32_0 = arith.constant 0 : i32
    %c0_i32_1 = arith.constant 0 : i32
    return %c0_i32, %c0_i32_0 : i32, i32
  }
  func.func @transform_2(%arg0: i32) -> (i32, i32) {
    %c0_i32 = arith.constant 0 : i32
    %c0_i32_0 = arith.constant 0 : i32
    %c0_i32_1 = arith.constant 0 : i32
    return %c0_i32, %c0_i32_0 : i32, i32
  }
  func.func @transform_3(%arg0: i32) -> (i32, i32) {
    %c0_i32 = arith.constant 0 : i32
    %c0_i32_0 = arith.constant 0 : i32
    %c0_i32_1 = arith.constant 0 : i32
    return %c0_i32, %c0_i32_0 : i32, i32
  }
  func.func @transform_4(%arg0: i32) -> i32 {
    %c0_i32 = arith.constant 0 : i32
    %c0_i32_0 = arith.constant 0 : i32
    return %c0_i32 : i32
  }
  func.func @transform_5(%arg0: i32) -> (i32, i32, i32) {
    %c0_i32 = arith.constant 0 : i32
    %c0_i32_0 = arith.constant 0 : i32
    %c0_i32_1 = arith.constant 0 : i32
    return %arg0, %c0_i32, %c0_i32_0 : i32, i32, i32
  }
}

</mosaic_0001>

<bundles_post_ra>
// kernel: tpu_custom_call.1
= control target key start
LH: loop header
LB: loop body
LE: loop exit
PB: predicated region body
PF: predicated region fallthrough
CT: control target
= control target key end

     0   :  { %10 = vsyncpa [#allocation4], 0  ;;  %s1012_s0 = inlined_call_operand.vmem [shape: f32[2,4,256], index: 0, kind: input, shape index: {}]   ;;  %s1013_s1 = inlined_call_operand.vmem [shape: f32[16,4], index: 1, kind: input, shape index: {}]   ;;  %s1014_s2 = inlined_call_operand.vmem [shape: f32[4,4], index: 2, kind: input, shape index: {}]   ;;  %s1015_s3 = inlined_call_operand.vmem [shape: f32[4,1], index: 3, kind: input, shape index: {}]   ;;  %s1016_s4 = inlined_call_operand.vmem [shape: f32[4], index: 4, kind: input, shape index: {}]   ;;  %s1017_s5 = inlined_call_operand.hbm [shape: f32[2,4,256], index: 5, kind: output, shape index: {}]  }
   0x1   :  { %11 = vsyncpa [#allocation3], 0 }
   0x2   :  { %13 = vsyncpa [#allocation3 + $0x1], 0  ;;  %s871_s18 = smov 0   ;;  %s873_s19 = smov 0  }
   0x3   :  { %s875_s20 = smov 0   ;;  %s877_s21 = smov 0  }
   0x4 LB: > { %s892_s22 = sadd.s32 4294967295, %s837_s21   ;;  %s643_s23 = sadd.s32 4294967294, %s837_s21   ;;  %s837_s21 = sphi %s877_s21, %s1023_s21   ;;  %s833_s20 = sphi %s875_s20, %s1022_s20   ;;  %s829_s19 = sphi %s873_s19, %s1021_s19   ;;  %s825_s18 = sphi %s871_s18, %s1020_s18  }
   0x5   : > { %s896_s24 = sadd.s32 1, %s837_s21   ;;  %s136_s25 = sadd.s32 1, %s833_s20 }
   0x6   : > { %s133_s26 = ssub.s32 %s837_s21, %s896_s24  ;;  %p146_p0 = scmp.ne.s32.totalorder %s833_s20, %s829_s19 }
   0x7   : > { %p134_p1 = scmp.eq.s32.totalorder %s133_s26, 0  ;;  %p147_p2 = scmp.eq.s32.totalorder %s892_s22, 1 }
   0x8   : > { %p152_p3 = scmp.ne.s32.totalorder %s829_s19, %s825_s18  ;;  %p153_p4 = scmp.eq.s32.totalorder %s643_s23, 1 }
   0x9   : > { %s907_s27 = scalar_select %p134_p1, %s833_s20, %s136_s25  }
   0xa   : > { %p909_p5 = por %p147_p2, %p146_p0  ;;  %p913_p6 = por %p153_p4, %p152_p3 }
   0xb   : > { %p644_p7 = scmp.ge.s32.totalorder %s837_s21, 1  ;;  %p160_p8 = scmp.lt.s32.totalorder %s837_s21, 3 }
   0xc   : > { %p685_p9 = scmp.eq.s32.totalorder %s892_s22, 0  ;;  %s181_s7 = sshll.u32 %s1016_s4, 4  ;;  %s182_s7 = int_to_ptr.vmem [resolvable:$true] %s181_s7 }
   0xd   : > { %p161_p10 = pnand %p644_p7, %p160_p8  ;;  %s839_s8 = smov [#allocation2]  }
   0xf   : > { %p677_p11 = pneg %p161_p10  ;;  %202 = sbr.rel (%p161_p10) target bundleno = 855 (0x357), region = 40 }
  0x11   : > { %p678_p12 = pnand %p685_p9, %p677_p11 }
  0x13   : > { %680 = dma.vmem_to_smem (!%p678_p12), %s182_s7, 16, %s839_s8, [#allocation4]  }
  0x14   : > { %816 = dma.done.wait (%p685_p9), [#allocation4], 16  }
  0x15   : > { %818 = vsyncadd (%p685_p9), [#allocation4], 4294967280 }
  0x16   : > { %209 = sfence }
  0x17   : > { %p232_p13 = scmp.lt.s32.totalorder %s892_s22, 1  ;;  %v840_v0 = vmov 0   ;;  %v244_v1 = vld [vmem:[%s1015_s3] sm:$0xf]  ;;  %vm257_vm0 = vcmask 1043456   ;;  %v242_v3 = vld [vmem:[%s1013_s1 + $0x8] sm:$0xff] }
  0x18   : > { %722 = vset.pattern.permute.xlu1 %v840_v0  ;;  %723 = vset.pattern.permute.xlu0 %v840_v0  ;;  %vm250_vm1 = vcmask 31744   ;;  %v241_v4 = vld [vmem:[%s1013_s1] sm:$0xff]  ;;  %s237_s26 = sld [smem:[#allocation2]]  ;;  %vm338_vm2 = vcmask 1040384   ;;  %s229_s10 = sand.u32 1, %s829_s19  }
  0x19   : > { %s233_s11 = scalar_select %p232_p13, %s892_s22, 1  ;;  %310 = vperm.xlu1 %722, %v244_v1  }
  0x1a   : > { %s652_s7 = sld [smem:[#allocation2 + $0x1]] }
  0x1b   : > { %s668_s12 = sshll.u32 %s233_s11, 3  ;;  %s653_s8 = sld [smem:[#allocation2 + $0x2]] }
  0x1c   : > { %s236_s15 = scalar_lea.vmem %s1012_s0, %s668_s12  ;;  %s654_s9 = sld [smem:[#allocation2 + $0x3]] }
  0x1d   : > { %v931_v2 = vld [vmem:[%s236_s15] sm:$0xff]  ;;  %s649_s11 = sshll.u32 %s229_s10, 3  ;;  %s669_s12 = sshll.u32 %s892_s22, 3 }
  0x1e   : > { %247 = vst [vmem:[#allocation1] ss:$2 sm:$0xff] %v931_v2  ;;  %v325_v18 = vstv %s237_s26  ;;  %s567_s15 = scalar_lea.hbm %s1017_s5, %s669_s12  ;;  %s231_s16 = scalar_lea.vmem [#allocation5], %s649_s11 }
  0x1f   : > { %s569_s17 = sshll.u32 %s231_s16, 4  ;;  %s571_s23 = sshll.u32 %s567_s15, 4  ;;  %s570_s17 = int_to_ptr.vmem [resolvable:$true] %s569_s17  ;;  %s572_s23 = int_to_ptr.hbm [resolvable:$true] %s571_s23 }
  0x20   : > { %s556_s22 = scalar_lea.sflag [#allocation3], %s229_s10  ;;  %s785_s25 = sshra.s32 %s572_s23, 4  ;;  %s786_s25 = int_to_ptr.hbm [resolvable:$true] %s785_s25 }
  0x21   : > { %s787_s26 = scalar_lea.hbm %s786_s25, 8  ;;  %p792_p3 = scmp.lt.s32.totalorder %s786_s25, %s1017_s5 }
  0x22   : > { %p788_p0 = scmp.ne.s32.totalorder %s786_s25, %s787_s26 }
  0x24   : > { %p789_p1 = pnand %p788_p0, %p909_p5 }
  0x25   : > { %v248_v5 = vld.sshfl [vmem:[#allocation1] sm:$0xff pattern:$0x75316420]  ;;  %v249_v6 = vld.sshfl [vmem:[#allocation1 + $0x8] sm:$0xff pattern:$0x75316420] }
  0x26   : > { %670 = vmatpush.msk.msra.mxu3 %vm257_vm0, %v248_v5  ;;  %658 = vmatpush.msk.msra.mxu1 %vm257_vm0, %v249_v6  ;;  %372 = vst [vmem:[#allocation1] ss:$2 sm:$0xff] %v931_v2  ;;  %p790_p2 = pneg %p789_p1 }
  0x27   : > { %657 = vmatmul.msk.f32.vlgmr.msra.gmra.mxu3 %vm250_vm1, %v242_v3  ;;  %659 = vmatmul.msk.f32.vlgmr.msra.gmra.mxu1 %vm250_vm1, %v241_v4 }
  0x28   : > { %655 = vmatpush.msk.msra.mxu0 %vm257_vm0, %v248_v5 }
  0x29   : > { %656 = vmatmul.msk.f32.vlgmr.msra.gmra.mxu0 %vm250_vm1, %v241_v4 }
  0x2d   : > { %v373_v7 = vld.sshfl [vmem:[#allocation1] sm:$0xff pattern:$0x75316420]  ;;  %v374_v8 = vld.sshfl [vmem:[#allocation1 + $0x8] sm:$0xff pattern:$0x75316420] }
  0x2e   : > { %v377_v9 = vsel %vm257_vm0, %v373_v7, 0.0  ;;  %v378_v10 = vsel %vm257_vm0, %v374_v8, 0.0  ;;  %383 = vst [vmem:[#allocation1] ss:$2 sm:$0xff] %v931_v2 }
  0x2f   : > { %660 = vmatmul.msk.f32.gmra.mxu1 %vm250_vm1, %v242_v3  ;;  %v379_v11 = vadd.f32 %v378_v10, %v377_v9 }
  0x31   : > { %380 = vadd.xlane.f32.xlu2 %v379_v11 }
  0x35   : > { %v384_v12 = vld.sshfl [vmem:[#allocation1] sm:$0xff pattern:$0x75316420]  ;;  %v385_v13 = vld.sshfl [vmem:[#allocation1 + $0x8] sm:$0xff pattern:$0x75316420] }
  0x36   : > { %v388_v14 = vsel %vm257_vm0, %v384_v12, -inf  ;;  %v389_v15 = vsel %vm257_vm0, %v385_v13, -inf }
  0x37   : > { %v390_v16 = vmax.f32 %v388_v14, %v389_v15 }
  0x39   : > { %391 = vmax.xlane.f32.xlu2 %v390_v16 }
  0x8b   : > { %v311_v46 = vpop.permute.xlu1 %310 }
  0xa4   : > { %v302_v17 = vpop.f32.mrf.mxu1 }
  0xa5   : > { %v314_v48 = vadd.f32 %v311_v46, %v302_v17  ;;  %v243_v17 = vld [vmem:[%s1014_s2] sm:$0xf] }
  0xa6   : > { %v279_v47 = vpop.f32.mrf.mxu0 }
  0xa7   : > { %v313_v49 = vadd.f32 %v311_v46, %v279_v47  ;;  %v316_v50 = vmul.f32 0.5, %v314_v48 }
  0xa9   : > { %v315_v51 = vmul.f32 0.5, %v313_v49 }
  0xaa   : > { %v282_v19 = vpop.f32.mrf.mxu3 }
  0xab   : > { %v326_v20 = vadd.f32 %v325_v18, %v282_v19  ;;  %v381_v19 = vpop.xlane.xlu2 %380 }
  0xac   : > { %v305_v21 = vpop.f32.mrf.mxu1 }
  0xad   : > { %v328_v22 = vmul.f32 0.5, %v326_v20  ;;  %v327_v23 = vadd.f32 %v325_v18, %v305_v21 }
  0xaf   : > { %724 = vtanh.f32 %v328_v22  ;;  %v329_v24 = vmul.f32 0.5, %v327_v23 }
  0xb1   : > { %726 = vtanh.f32 %v329_v24 }
  0xb3   : > { %v392_v21 = vpop.xlane.xlu2 %391 }
  0xb5   : > { %v725_v25 = vpop.eup %724 }
  0xb6   : > { %v332_v26 = vmul.f32 0.5, %v725_v25 }
  0xb7   : > { %v727_v27 = vpop.eup %726 }
  0xb8   : > { %v334_v28 = vadd.f32 0.5, %v332_v26  ;;  %v333_v29 = vmul.f32 0.5, %v727_v27 }
  0xba   : > { %v336_v30 = vmul.f32 %v334_v28, %v326_v20  ;;  %v335_v31 = vadd.f32 0.5, %v333_v29  ;;  %v382_v20 = vmul.f32 0.00390625, %v381_v19 }
  0xbc   : > { %v337_v32 = vmul.f32 %v335_v31, %v327_v23  ;;  %v339_v33 = vsel %vm338_vm2, %v336_v30, -inf  ;;  %v393_v22 = vsel %vm257_vm0, %v382_v20, -inf  ;;  %v426_v23 = vsel %vm257_vm0, %v392_v21, -inf }
  0xbd   : > { %v394_v24 = vrot.slane %v393_v22, 4  ;;  %v427_v25 = vrot.slane %v426_v23, 4 }
  0xbe   : > { %v340_v34 = vsel %vm338_vm2, %v337_v32, -inf }
  0xbf   : > { %v341_v35 = vmax.f32 %v339_v33, %v340_v34  ;;  %v395_v26 = vmax.f32 %v393_v22, %v394_v24  ;;  %v428_v27 = vmax.f32 %v426_v23, %v427_v25  ;;  %v459_v23 = vstv %s652_s7  ;;  %s791_s7 = scalar_lea.hbm %s1017_s5, 16 }
  0xc0   : > { %v461_v24 = vstv %s653_s8  ;;  %p793_p4 = scmp.lt.s32.totalorder %s791_s7, %s787_s26 }
  0xc1   : > { %342 = vmax.xlane.f32.xlu0 %v341_v35  ;;  %v396_v28 = vrot.slane %v395_v26, 2  ;;  %v429_v29 = vrot.slane %v428_v27, 2 }
  0xc2   : > { %p794_p7 = por %p793_p4, %p792_p3 }
  0xc3   : > { %v430_v31 = vmax.f32 %v428_v27, %v429_v29 }
  0xc4   : > { %p795_p8 = pnand %p794_p7, %p790_p2 }
  0xc5   : > { %v431_v33 = vrot.slane %v430_v31, 1 }
  0xc7   : > { %v432_v35 = vmax.f32 %v430_v31, %v431_v33 }
 0x134   : > { %v343_v36 = vpop.xlane.xlu0 %342 }
 0x135   : > { %v344_v37 = vsub.f32 %v336_v30, %v343_v36  ;;  %v345_v38 = vsub.f32 %v337_v32, %v343_v36  ;;  %v397_v30 = vmax.f32 %v395_v26, %v396_v28 }
 0x137   : > { %v346_v39 = vmul.f32 1.442695, %v344_v37  ;;  %v348_v40 = vmul.f32 1.442695, %v345_v38  ;;  %v398_v32 = vrot.slane %v397_v30, 1  ;;  %v433_v37 = vsub.f32 %v392_v21, %v432_v35 }
 0x139   : > { %728 = vpow2.f32 %v346_v39  ;;  %v399_v34 = vmax.f32 %v397_v30, %v398_v32  ;;  %v434_v39 = vmul.f32 1.442695, %v433_v37 }
 0x13a   : > { %730 = vpow2.f32 %v348_v40 }
 0x13b   : > { %v400_v36 = vsub.f32 %v382_v20, %v399_v34 }
 0x13d   : > { %v401_v38 = vmul.f32 1.442695, %v400_v36 }
 0x13f   : > { %v729_v41 = vpop.eup %728 }
 0x140   : > { %v731_v42 = vpop.eup %730  ;;  %v350_v43 = vsel %vm338_vm2, %v729_v41, 0.0 }
 0x141   : > { %v351_v44 = vsel %vm338_vm2, %v731_v42, 0.0 }
 0x142   : > { %v352_v45 = vadd.f32 %v351_v44, %v350_v43 }
 0x144   : > { %353 = vadd.xlane.f32.xlu0 %v352_v45 }
 0x1b7   : > { %v354_v52 = vpop.xlane.xlu0 %353 }
 0x1b8   : > { %732 = vrcp.f32 %v354_v52  ;;  %v366_v59 = vand.u32 2147483648, %v354_v52  ;;  %v364_v62 = vand.u32 2147483647, %v354_v52  ;;  %vm360_vm4 = vweird.f32 %v354_v52 }
 0x1b9   : > { %734 = vtanh.f32 %v316_v50 }
 0x1ba   : > { %736 = vtanh.f32 %v315_v51  ;;  %v367_v0 = vor.u32 1.1754944e-38, %v366_v59  ;;  %vm365_vm6 = vcmp.eq.f32.partialorder %v364_v62, 8.507059e+37 }
 0x1bb   : > { %738 = vpow2.f32 %v401_v38 }
 0x1bc   : > { %740 = vpow2.f32 %v434_v39 }
 0x1be   : > { %v733_v53 = vpop.eup %732 }
 0x1bf   : > { %v735_v54 = vpop.eup %734  ;;  %v356_v55 = vmul.f32 %v733_v53, %v354_v52  ;;  %vm361_vm3 = vweird.f32 %v733_v53 }
 0x1c0   : > { %v737_v56 = vpop.eup %736  ;;  %v320_v58 = vmul.f32 0.5, %v735_v54  ;;  %vm362_vm5 = vmor %vm360_vm4, %vm361_vm3 }
 0x1c1   : > { %v357_v57 = vsub.f32 1.0, %v356_v55  ;;  %v319_v60 = vmul.f32 0.5, %v737_v56  ;;  %v739_v40 = vpop.eup %738 }
 0x1c2   : > { %v322_v1 = vadd.f32 0.5, %v320_v58 }
 0x1c3   : > { %v358_v61 = vmul.f32 %v733_v53, %v357_v57  ;;  %v321_v3 = vadd.f32 0.5, %v319_v60 }
 0x1c4   : > { %v957_v8 = vmul.f32 %v322_v1, %v314_v48 }
 0x1c5   : > { %v359_v63 = vadd.f32 %v733_v53, %v358_v61  ;;  %v959_v9 = vmul.f32 %v321_v3, %v313_v49 }
 0x1c7   : > { %v363_v4 = vsel %vm362_vm5, %v733_v53, %v359_v63 }
 0x1c8   : > { %v368_v5 = vsel %vm365_vm6, %v367_v0, %v363_v4 }
 0x1c9   : > { %v370_v6 = vmul.f32 %v729_v41, %v368_v5  ;;  %v371_v7 = vmul.f32 %v731_v42, %v368_v5  ;;  %v741_v41 = vpop.eup %740  ;;  %v403_v42 = vsel %vm257_vm0, %v739_v40, 0.0 }
 0x1ca   : > { %v436_v43 = vsel %vm257_vm0, %v741_v41, 0.0  ;;  %v404_v44 = vrot.slane %v403_v42, 4 }
 0x1cb   : > { %v464_v10 = vperm.slane %v370_v6, 0  ;;  %v465_v11 = vperm.slane %v371_v7, 0  ;;  %v437_v45 = vrot.slane %v436_v43, 4 }
 0x1cc   : > { %v405_v46 = vadd.f32 %v404_v44, %v403_v42 }
 0x1cd   : > { %v466_v12 = vmul.f32 %v464_v10, %v959_v9  ;;  %v467_v13 = vmul.f32 %v465_v11, %v957_v8  ;;  %v438_v47 = vadd.f32 %v437_v45, %v436_v43  ;;  %v520_v43 = vstv %s654_s9 }
 0x1ce   : > { %v406_v48 = vrot.slane %v405_v46, 2 }
 0x1cf   : > { %v468_v14 = vsel %vm257_vm0, %v466_v12, 0.0  ;;  %v469_v15 = vsel %vm257_vm0, %v467_v13, 0.0  ;;  %v439_v49 = vrot.slane %v438_v47, 2 }
 0x1d0   : > { %v470_v16 = vadd.f32 %v469_v15, %v468_v14  ;;  %v407_v50 = vadd.f32 %v406_v48, %v405_v46 }
 0x1d1   : > { %v440_v51 = vadd.f32 %v439_v49, %v438_v47 }
 0x1d2   : > { %471 = vadd.xlane.f32.xlu1 %v470_v16  ;;  %v408_v52 = vrot.slane %v407_v50, 1 }
 0x1d3   : > { %v441_v54 = vrot.slane %v440_v51, 1 }
 0x1d4   : > { %v409_v56 = vadd.f32 %v408_v52, %v407_v50 }
 0x1d5   : > { %v442_v57 = vadd.f32 %v441_v54, %v440_v51 }
 0x1d6   : > { %vm415_vm7 = vweird.f32 %v409_v56  ;;  %v421_v10 = vand.u32 2147483648, %v409_v56  ;;  %v419_v14 = vand.u32 2147483647, %v409_v56 }
 0x1d7   : > { %vm448_vm9 = vweird.f32 %v442_v57  ;;  %v454_v7 = vand.u32 2147483648, %v442_v57  ;;  %v452_v12 = vand.u32 2147483647, %v442_v57 }
 0x1d8   : > { %v422_v16 = vor.u32 1.1754944e-38, %v421_v10  ;;  %vm420_vm14 = vcmp.eq.f32.partialorder %v419_v14, 8.507059e+37 }
 0x1d9   : > { %v455_v15 = vor.u32 1.1754944e-38, %v454_v7  ;;  %vm453_vm13 = vcmp.eq.f32.partialorder %v452_v12, 8.507059e+37 }
 0x245   : > { %v472_v18 = vpop.xlane.xlu1 %471 }
 0x246   : > { %661 = vmatpush.msk.msra.mxu2 %vm257_vm0, %v472_v18 }
 0x247   : > { %662 = vmatmul.msk.f32.vlgmr.msra.gmra.mxu2 %vm250_vm1, %v243_v17 }
 0x2ca   : > { %v512_v53 = vpop.f32.mrf.mxu2 }
 0x2cb   : > { %v515_v55 = vmul.f32 0.5, %v512_v53 }
 0x2cd   : > { %742 = vtanh.f32 %v515_v55 }
 0x2ce   : > { %744 = vrcp.f32 %v409_v56 }
 0x2cf   : > { %746 = vrcp.f32 %v442_v57 }
 0x2d3   : > { %v743_v58 = vpop.eup %742 }
 0x2d4   : > { %v517_v59 = vmul.f32 0.5, %v743_v58  ;;  %v745_v61 = vpop.eup %744 }
 0x2d5   : > { %v747_v63 = vpop.eup %746  ;;  %v411_v1 = vmul.f32 %v745_v61, %v409_v56  ;;  %vm416_vm8 = vweird.f32 %v745_v61 }
 0x2d6   : > { %v518_v60 = vadd.f32 0.5, %v517_v59  ;;  %v444_v0 = vmul.f32 %v747_v63, %v442_v57  ;;  %vm449_vm10 = vweird.f32 %v747_v63  ;;  %vm417_vm11 = vmor %vm415_vm7, %vm416_vm8 }
 0x2d7   : > { %v412_v4 = vsub.f32 1.0, %v411_v1  ;;  %vm450_vm12 = vmor %vm448_vm9, %vm449_vm10 }
 0x2d8   : > { %v519_v62 = vmul.f32 %v518_v60, %v512_v53  ;;  %v445_v3 = vsub.f32 1.0, %v444_v0 }
 0x2d9   : > { %v413_v6 = vmul.f32 %v745_v61, %v412_v4 }
 0x2da   : > { %543 = vperm.xlu0 %723, %v519_v62   ;;  %v446_v5 = vmul.f32 %v747_v63, %v445_v3 }
 0x2db   : > { %v414_v13 = vadd.f32 %v745_v61, %v413_v6 }
 0x2dc   : > { %v447_v11 = vadd.f32 %v747_v63, %v446_v5 }
 0x2dd   : > { %v418_v18 = vsel %vm417_vm11, %v745_v61, %v414_v13 }
 0x2de   : > { %v451_v17 = vsel %vm450_vm12, %v747_v63, %v447_v11  ;;  %v423_v20 = vsel %vm420_vm14, %v422_v16, %v418_v18 }
 0x2df   : > { %v456_v19 = vsel %vm453_vm13, %v455_v15, %v451_v17  ;;  %v425_v22 = vmul.f32 %v739_v40, %v423_v20 }
 0x2e0   : > { %v458_v21 = vmul.f32 %v741_v41, %v456_v19 }
 0x2e1   : > { %v460_v25 = vmul.f32 %v459_v23, %v425_v22 }
 0x2e2   : > { %v462_v26 = vmul.f32 %v461_v24, %v458_v21 }
 0x2e4   : > { %v463_v27 = vadd.f32 %v462_v26, %v460_v25 }
 0x2e6   : > { %v474_v28 = vmul.f32 %v463_v27, %v957_v8  ;;  %v473_v29 = vmul.f32 %v463_v27, %v959_v9 }
 0x2e8   : > { %v482_v30 = vsel %vm257_vm0, %v474_v28, 0.0  ;;  %v475_v31 = vsel %vm257_vm0, %v473_v29, 0.0 }
 0x2e9   : > { %v483_v32 = vrot.slane %v482_v30, 4  ;;  %v476_v33 = vrot.slane %v475_v31, 4 }
 0x2eb   : > { %v484_v34 = vadd.f32 %v483_v32, %v482_v30  ;;  %v477_v35 = vadd.f32 %v476_v33, %v475_v31 }
 0x2ed   : > { %v485_v36 = vrot.slane %v484_v34, 2  ;;  %v478_v37 = vrot.slane %v477_v35, 2 }
 0x2ef   : > { %v486_v38 = vadd.f32 %v485_v36, %v484_v34  ;;  %v479_v39 = vadd.f32 %v478_v37, %v477_v35 }
 0x2f1   : > { %v487_v40 = vrot.slane %v486_v38, 1  ;;  %v480_v41 = vrot.slane %v479_v39, 1 }
 0x2f3   : > { %v488_v42 = vadd.f32 %v487_v40, %v486_v38  ;;  %v481_v8 = vadd.f32 %v480_v41, %v479_v39 }
 0x2f5   : > { %v522_v44 = vadd.f32 %v520_v43, %v488_v42  ;;  %v521_v9 = vadd.f32 %v520_v43, %v481_v8 }
 0x2f7   : > { %v524_v45 = vmul.f32 0.5, %v522_v44  ;;  %v523_v46 = vmul.f32 0.5, %v521_v9 }
 0x2f9   : > { %748 = vtanh.f32 %v524_v45 }
 0x2fa   : > { %750 = vtanh.f32 %v523_v46 }
 0x2ff   : > { %v749_v47 = vpop.eup %748 }
 0x300   : > { %v751_v48 = vpop.eup %750  ;;  %v528_v49 = vmul.f32 0.5, %v749_v47 }
 0x301   : > { %v527_v50 = vmul.f32 0.5, %v751_v48 }
 0x302   : > { %v530_v51 = vadd.f32 0.5, %v528_v49 }
 0x303   : > { %v529_v52 = vadd.f32 0.5, %v527_v50 }
 0x304   : > { %v532_v53 = vmul.f32 %v530_v51, %v522_v44 }
 0x305   : > { %v531_v54 = vmul.f32 %v529_v52, %v521_v9 }
 0x306   : > { %v534_v55 = vmul.f32 0.5, %v532_v53 }
 0x307   : > { %v533_v56 = vmul.f32 0.5, %v531_v54 }
 0x308   : > { %752 = vtanh.f32 %v534_v55 }
 0x309   : > { %754 = vtanh.f32 %v533_v56 }
 0x30e   : > { %v753_v57 = vpop.eup %752 }
 0x30f   : > { %v755_v58 = vpop.eup %754  ;;  %v538_v59 = vmul.f32 0.5, %v753_v57 }
 0x310   : > { %v537_v60 = vmul.f32 0.5, %v755_v58 }
 0x311   : > { %v540_v61 = vadd.f32 0.5, %v538_v59 }
 0x312   : > { %v539_v63 = vadd.f32 0.5, %v537_v60 }
 0x34c   : > { %v544_v62 = vpop.permute.xlu0 %543 }
 0x34d   : > { %v547_v0 = vmul.f32 %v544_v62, %v540_v61  ;;  %v546_v1 = vmul.f32 %v544_v62, %v539_v63 }
 0x34f   : > { %v550_v3 = vrot.slane %v547_v0, 4 }
 0x351   : > { %v551_v4 = vsel %vm257_vm0, %v546_v1, %v550_v3 }
 0x352   : > { %v553_v5 = vadd.f32 %v551_v4, %v931_v2 }
 0x354   : > { %554 = vst [vmem:[%s231_s16] sm:$0xff] %v553_v5 }
 0x355   : > { %798 = shalt.err (!%p795_p8)
}
 0x356   : > { %675 = dma.vmem_to_hbm [thread:$0]  (%p909_p5), %s570_s17, 128, %s572_s23, %s556_s22  }
 0x357 PF: > { %p687_p9 = scmp.ge.s32.totalorder %s837_s21, 2  ;;  %s583_s10 = sand.u32 1, %s825_s18  }
 0x358   : > { %s584_s11 = scalar_lea.sflag [#allocation3], %s583_s10 }
 0x359   : > { %p682_p10 = pnand %p687_p9, %p913_p6 }
 0x35b   : > { %p683_p11 = pneg %p682_p10 }
 0x35d   : > { %820 = dma.done.wait (%p683_p11), %s584_s11, 128  }
 0x35e   : > { %822 = vsyncadd (%p683_p11), %s584_s11, 4294967168  ;;  %p16_p12 = scmp.ge.s32.totalorder %s896_s24, 4   ;;  %s1020_s18 = smov %s829_s19 }
 0x35f   : > { %s1021_s19 = smov %s833_s20  ;;  %s1022_s20 = smov %s907_s27 }
 0x360   : > { %s1023_s21 = smov %s896_s24  ;;  %18 = sbr.rel (!%p16_p12) target bundleno = 4 (0x4), region = 80 }
 0x365   :  { %590 = vsyncpa [#allocation3], 1 }
 0x366   :  { %592 = vsyncpa [#allocation3 + $0x1], 1 }
 0x367   :  { %593 = vsyncpa [#allocation4], 1 }
 0x368   :  { %595 = vsyncpa [#allocation4 + $0x1], 1 }

</bundles_post_ra>
